<compile_context>
chip_gen: v7x
topology: tpu7x:2x2x1
jax: 0.10.0
libtpu: 0.0.40
codegen_flags: <defaults>
</compile_context>

<pallas_src>
import jax
import jax.numpy as jnp
import numpy as np
from jax import lax
from jax.experimental import pallas as pl
from jax.experimental.pallas import tpu as pltpu

NEG_INF = -1e30


def _span_pool_kernel(tile_rows_ref, a_ref, e_ref, scores_ref, hs_ref, wx_ref):
    """One grid step == one tile of TILE_SPANS spans, all from the same batch row.

    tile_rows_ref : SMEM (num_tiles,) int32   batch row of each tile (index_map only)
    a_ref, e_ref  : VMEM (TS, 1) int32        span starts / ends for this tile
    scores_ref    : VMEM (1, 1, L) f32        precomputed attention logits of this row
    hs_ref        : VMEM (1, L, D) native dt  hidden states of this tile's batch row
    wx_ref        : VMEM (TS, D) f32          att^T @ x for every span in the tile
    """
    del tile_rows_ref  # only consumed by the index_maps

    x = hs_ref[0]                                   # (L, D), native dtype
    L = x.shape[0]
    TS = wx_ref.shape[0]

    scores = scores_ref[0]                          # (1, L) f32, shared by all spans of the row
    a = a_ref[...]                                  # (TS, 1) int32
    e = e_ref[...]                                  # (TS, 1) int32

    # Lane-dense (TS, L) layout: sequence axis lives in the 128-wide lane dimension.
    pos = lax.broadcasted_iota(jnp.int32, (TS, L), 1)
    valid = (pos >= a) & (pos < e)                  # (TS, L)

    # Span-masked softmax along lanes, in f32.
    masked = jnp.where(valid, scores, NEG_INF)      # (TS, L)
    m = jnp.max(masked, axis=-1, keepdims=True)     # (TS, 1)
    p = jnp.exp(masked - m)                         # (TS, L)
    denom = jnp.sum(p, axis=-1, keepdims=True)      # (TS, 1)
    att = p * pl.reciprocal(denom, approx=True)     # (TS, L), EUP reciprocal

    # att @ x on the MXU: contraction over lanes of att / sublanes of x, no transpose.
    # (The (D, H) projection and bias are applied outside the kernel: because softmax
    #  weights sum to 1, att^T @ (xW + b) == (att^T @ x) @ W + b.)
    wx = jnp.dot(att.astype(x.dtype), x, preferred_element_type=jnp.float32)   # (TS, D)
    wx_ref[...] = wx.astype(wx_ref.dtype)


def _plan_tiles(spans_np, tile_spans, seq_len):
    """Group spans by batch row and pad each group to a multiple of tile_spans.

    Returns:
      padded_spans : (P, 3) int32, row-grouped spans with dummy [row, 0, L) padding
      tile_rows    : (P // tile_spans,) int32, batch row of each tile
      out_gather   : (S,) int64, padded-row index of each original span
    """
    S = spans_np.shape[0]
    order = np.argsort(spans_np[:, 0], kind="stable")
    sorted_spans = spans_np[order]

    padded_chunks = []
    tile_rows = []
    gather_sorted = np.empty(S, dtype=np.int64)
    pos = 0
    start = 0
    while start < S:
        row = int(sorted_spans[start, 0])
        end = start
        while end < S and int(sorted_spans[end, 0]) == row:
            end += 1
        g = end - start
        n_tiles = -(-g // tile_spans)
        pad = n_tiles * tile_spans - g
        gather_sorted[start:end] = pos + np.arange(g)
        padded_chunks.append(sorted_spans[start:end])
        if pad:
            padded_chunks.append(
                np.tile(np.array([[row, 0, seq_len]], dtype=np.int32), (pad, 1)))
        tile_rows.extend([row] * n_tiles)
        pos += n_tiles * tile_spans
        start = end

    padded_spans = np.concatenate(padded_chunks, axis=0).astype(np.int32)
    tile_rows_arr = np.asarray(tile_rows, dtype=np.int32)
    out_gather = np.empty(S, dtype=np.int64)
    out_gather[order] = gather_sorted
    return padded_spans, tile_rows_arr, out_gather


def span_pool(hs, spans, W, b, v, tile_spans=8):
    """Pool one span set.

    hs    : (N, L, D) float32 or bfloat16
    spans : (num_spans, 3) int32 rows (i, a, b) — concrete (host) values
    W     : (D, H), b: (H,), v: (H,)
    returns (num_spans, H) float32
    """
    N, L, D = hs.shape
    H = W.shape[1]
    spans_np = np.asarray(spans, dtype=np.int32)

    padded_spans, tile_rows, out_gather = _plan_tiles(spans_np, tile_spans, L)
    num_padded = padded_spans.shape[0]
    num_tiles = num_padded // tile_spans

    W_f32 = W.astype(jnp.float32)
    b_f32 = b.astype(jnp.float32)
    v_f32 = v.astype(jnp.float32)
    u = W_f32 @ v_f32                                  # (D,)

    # Attention logits for every (row, position), computed once per row in XLA:
    # proj @ v == x @ (W @ v) + (b . v); the constant term is softmax-invariant.
    scores = jnp.einsum("nld,d->nl", hs, u.astype(hs.dtype),
                        preferred_element_type=jnp.float32)
    scores = scores.astype(jnp.float32).reshape(N, 1, L)

    a_arr = jnp.asarray(padded_spans[:, 1].reshape(num_padded, 1), dtype=jnp.int32)
    e_arr = jnp.asarray(padded_spans[:, 2].reshape(num_padded, 1), dtype=jnp.int32)
    tile_rows_j = jnp.asarray(tile_rows, dtype=jnp.int32)

    wx = pl.pallas_call(
        _span_pool_kernel,
        out_shape=jax.ShapeDtypeStruct((num_padded, D), jnp.float32),
        grid_spec=pltpu.PrefetchScalarGridSpec(
            num_scalar_prefetch=1,
            grid=(num_tiles,),
            in_specs=[
                pl.BlockSpec((tile_spans, 1), lambda t, rows: (t, 0)),
                pl.BlockSpec((tile_spans, 1), lambda t, rows: (t, 0)),
                pl.BlockSpec((1, 1, L), lambda t, rows: (rows[t], 0, 0)),
                # batch row shared by every span of this tile (consecutive tiles with
                # the same row re-use the (1, L, D) block without a fresh DMA)
                pl.BlockSpec((1, L, D), lambda t, rows: (rows[t], 0, 0)),
            ],
            out_specs=pl.BlockSpec((tile_spans, D), lambda t, rows: (t, 0)),
        ),
        compiler_params=pltpu.CompilerParams(
            dimension_semantics=("parallel",)),
    )(tile_rows_j, a_arr, e_arr, scores, hs)

    # Hoisted output projection: one full-MXU-occupancy (S, D) @ (D, H) matmul in XLA.
    wx_sel = wx[np.asarray(out_gather)]
    out = jnp.dot(wx_sel, W_f32, preferred_element_type=jnp.float32) + b_f32[None, :]

    # PyTorch returns an all-zero vector for empty spans ([a, a)); match that here.
    valid = jnp.asarray((spans_np[:, 2] > spans_np[:, 1]).astype(np.float32))
    return out * valid[:, None]


def attention_pooler_forward(hidden_states, target_spans, params, layer_to_probe, single_span):
    """JAX/Pallas equivalent of AttentionPooler.forward.

    hidden_states : (num_layers, N, L, D)
    target_spans  : (num_spans, 3) if single_span else (2, num_spans, 3)
    params        : list of two tuples (W, b, v)
    """
    hs = hidden_states[layer_to_probe]
    if not single_span:
        p1 = span_pool(hs, target_spans[0], *params[0])
        p2 = span_pool(hs, target_spans[1], *params[1])
        return jnp.concatenate([p1, p2], axis=1)
    return span_pool(hs, target_spans, *params[0])


def _reference_single_pool(hs, spans, W, b, v):
    """Pure-JAX reference mirroring the PyTorch loop."""
    outs = []
    for i, a, e in np.asarray(spans).tolist():
        x = hs[i, a:e]                      # (len, D)
        proj = x @ W + b                    # (len, H)
        sc = proj @ v.reshape(-1, 1)        # (len, 1)
        att = jax.nn.softmax(sc, axis=0)
        outs.append(jnp.sum(att * proj, axis=0))
    return jnp.stack(outs)


if __name__ == "__main__":
    # Small deterministic config.
    num_layers, N, L = 3, 2, 16
    input_dim, hidden_dim = 32, 32
    layer_to_probe = 1
    single_span = False
    num_spans = 4

    key = jax.random.PRNGKey(0)
    k_hs, k_w0, k_b0, k_v0, k_w1, k_b1, k_v1 = jax.random.split(key, 7)

    hidden_states = jax.random.normal(
        k_hs, (num_layers, N, L, input_dim), dtype=jnp.float32
    )

    params = [
        (
            0.05 * jax.random.normal(k_w0, (input_dim, hidden_dim), jnp.float32),
            0.05 * jax.random.normal(k_b0, (hidden_dim,), jnp.float32),
            0.05 * jax.random.normal(k_v0, (hidden_dim,), jnp.float32),
        ),
        (
            0.05 * jax.random.normal(k_w1, (input_dim, hidden_dim), jnp.float32),
            0.05 * jax.random.normal(k_b1, (hidden_dim,), jnp.float32),
            0.05 * jax.random.normal(k_v1, (hidden_dim,), jnp.float32),
        ),
    ]

    # Two span sets (pair task), each span is (batch_index, start, end).
    target_spans = jnp.array(
        [
            [[0, 1, 5], [1, 2, 8], [0, 0, 16], [1, 4, 7]],
            [[0, 6, 10], [1, 0, 3], [0, 3, 9], [1, 10, 16]],
        ],
        dtype=jnp.int32,
    )

    out = attention_pooler_forward(
        hidden_states, target_spans, params, layer_to_probe, single_span
    )
    out = jax.block_until_ready(out)
    assert out.shape == (num_spans, 2 * hidden_dim), out.shape

    # Verify against a pure-JAX reference of the PyTorch forward.
    # Tolerance is 1e-3 (not 1e-4) to allow for the EUP approximate reciprocal in the
    # softmax normalization; the algebraic rewrite itself is exact up to f32 rounding.
    hs_probe = hidden_states[layer_to_probe]
    ref = jnp.concatenate(
        [
            _reference_single_pool(hs_probe, target_spans[0], *params[0]),
            _reference_single_pool(hs_probe, target_spans[1], *params[1]),
        ],
        axis=1,
    )
    np.testing.assert_allclose(np.asarray(out), np.asarray(ref), rtol=1e-3, atol=1e-3)

    print("KERNEL_OK")
</pallas_src>

<mosaic_0001>
module attributes {stable_mosaic.version = 11 : i64} {
  func.func @_span_pool_kernel(%arg0: i32, %arg1: memref<2xi32, #tpu.memory_space<smem>>, %arg2: memref<8x1xi32, #tpu.memory_space<vmem>>, %arg3: memref<8x1xi32, #tpu.memory_space<vmem>>, %arg4: memref<1x1x16xf32, #tpu.memory_space<vmem>>, %arg5: memref<1x16x32xf32, #tpu.memory_space<vmem>>, %arg6: memref<8x32xf32, #tpu.memory_space<vmem>>) attributes {dimension_semantics = [#tpu.dimension_semantics<parallel>], iteration_bounds = array<i64: 2>, scalar_prefetch = 1 : i64, scratch_operands = 0 : i64, tpu.core_type = #tpu.core_type<tc>, window_params = [{transform_indices = @transform_0, window_bounds = array<i64: 8, 1>}, {transform_indices = @transform_1, window_bounds = array<i64: 8, 1>}, {transform_indices = @transform_2, window_bounds = array<i64: 1, 1, 16>}, {transform_indices = @transform_3, window_bounds = array<i64: 1, 16, 32>}, {transform_indices = @transform_4, window_bounds = array<i64: 8, 32>}]} {
    %c0 = arith.constant 0 : index
    %c0_0 = arith.constant 0 : index
    %c0_1 = arith.constant 0 : index
    %0 = vector.load %arg5[%c0, %c0_0, %c0_1] : memref<1x16x32xf32, #tpu.memory_space<vmem>>, vector<1x16x32xf32>
    %1 = vector.shape_cast %0 : vector<1x16x32xf32> to vector<16x32xf32>
    %c0_2 = arith.constant 0 : index
    %c0_3 = arith.constant 0 : index
    %c0_4 = arith.constant 0 : index
    %2 = vector.load %arg4[%c0_2, %c0_3, %c0_4] : memref<1x1x16xf32, #tpu.memory_space<vmem>>, vector<1x1x16xf32>
    %3 = vector.shape_cast %2 : vector<1x1x16xf32> to vector<1x16xf32>
    %c0_5 = arith.constant 0 : index
    %c0_6 = arith.constant 0 : index
    %4 = vector.load %arg2[%c0_5, %c0_6] : memref<8x1xi32, #tpu.memory_space<vmem>>, vector<8x1xi32>
    %c0_7 = arith.constant 0 : index
    %c0_8 = arith.constant 0 : index
    %5 = vector.load %arg3[%c0_7, %c0_8] : memref<8x1xi32, #tpu.memory_space<vmem>>, vector<8x1xi32>
    %6 = tpu.iota {dimensions = array<i32: 1>} : vector<8x16xi32>
    %7 = vector.broadcast %4 : vector<8x1xi32> to vector<8x16xi32>
    %8 = arith.cmpi sge, %6, %7 : vector<8x16xi32>
    %9 = vector.broadcast %5 : vector<8x1xi32> to vector<8x16xi32>
    %10 = arith.cmpi slt, %6, %9 : vector<8x16xi32>
    %11 = arith.andi %8, %10 : vector<8x16xi1>
    %cst = arith.constant -1.000000e+30 : f32
    %12 = vector.shape_cast %3 : vector<1x16xf32> to vector<1x16xf32>
    %13 = vector.broadcast %12 : vector<1x16xf32> to vector<8x16xf32>
    %14 = vector.broadcast %cst : f32 to vector<8x16xf32>
    %15 = arith.select %11, %13, %14 : vector<8x16xi1>, vector<8x16xf32>
    %cst_9 = arith.constant dense<0xFF800000> : vector<8xf32>
    %16 = vector.multi_reduction <maximumf>, %15, %cst_9 [1] : vector<8x16xf32> to vector<8xf32>
    %17 = vector.shape_cast %16 : vector<8xf32> to vector<8x1xf32>
    %18 = vector.broadcast %17 : vector<8x1xf32> to vector<8x16xf32>
    %19 = arith.subf %15, %18 : vector<8x16xf32>
    %20 = math.exp %19 : vector<8x16xf32>
    %cst_10 = arith.constant dense<0.000000e+00> : vector<8xf32>
    %21 = vector.multi_reduction <add>, %20, %cst_10 [1] : vector<8x16xf32> to vector<8xf32>
    %22 = vector.shape_cast %21 : vector<8xf32> to vector<8x1xf32>
    %23 = tpu.reciprocal %22 {approx = true} : vector<8x1xf32> -> vector<8x1xf32>
    %24 = vector.broadcast %23 : vector<8x1xf32> to vector<8x16xf32>
    %25 = arith.mulf %20, %24 : vector<8x16xf32>
    %cst_11 = arith.constant dense<0.000000e+00> : vector<8x32xf32>
    %26 = tpu.matmul %25, %1, %cst_11 {dimension_numbers = #tpu.dot_dimension_numbers<[1], [0], [0], [1], [0, 0, 1, 1], [], []>} : vector<8x16xf32>, vector<16x32xf32>, vector<8x32xf32> -> vector<8x32xf32>
    %c0_12 = arith.constant 0 : index
    %c0_13 = arith.constant 0 : index
    %27 = vector.load %arg6[%c0_12, %c0_13] : memref<8x32xf32, #tpu.memory_space<vmem>>, vector<8x32xf32>
    tpu.vector_store %arg6[%c0_12, %c0_13], %26 {strides = array<i32>} : memref<8x32xf32, #tpu.memory_space<vmem>>, vector<8x32xf32>,
    return
  }
  func.func @transform_0(%arg0: i32, %arg1: memref<2xi32, #tpu.memory_space<smem>>) -> (i32, i32) {
    %c0_i32 = arith.constant 0 : i32
    %c0_i32_0 = arith.constant 0 : i32
    return %arg0, %c0_i32 : i32, i32
  }
  func.func @transform_1(%arg0: i32, %arg1: memref<2xi32, #tpu.memory_space<smem>>) -> (i32, i32) {
    %c0_i32 = arith.constant 0 : i32
    %c0_i32_0 = arith.constant 0 : i32
    return %arg0, %c0_i32 : i32, i32
  }
  func.func @transform_2(%arg0: i32, %arg1: memref<2xi32, #tpu.memory_space<smem>>) -> (i32, i32, i32) {
    %0 = arith.index_cast %arg0 : i32 to index
    %1 = memref.load %arg1[%0] : memref<2xi32, #tpu.memory_space<smem>>
    %c0_i32 = arith.constant 0 : i32
    %c0_i32_0 = arith.constant 0 : i32
    %c0_i32_1 = arith.constant 0 : i32
    return %1, %c0_i32, %c0_i32_0 : i32, i32, i32
  }
  func.func @transform_3(%arg0: i32, %arg1: memref<2xi32, #tpu.memory_space<smem>>) -> (i32, i32, i32) {
    %0 = arith.index_cast %arg0 : i32 to index
    %1 = memref.load %arg1[%0] : memref<2xi32, #tpu.memory_space<smem>>
    %c0_i32 = arith.constant 0 : i32
    %c0_i32_0 = arith.constant 0 : i32
    %c0_i32_1 = arith.constant 0 : i32
    return %1, %c0_i32, %c0_i32_0 : i32, i32, i32
  }
  func.func @transform_4(%arg0: i32, %arg1: memref<2xi32, #tpu.memory_space<smem>>) -> (i32, i32) {
    %c0_i32 = arith.constant 0 : i32
    %c0_i32_0 = arith.constant 0 : i32
    return %arg0, %c0_i32 : i32, i32
  }
}

</mosaic_0001>

<bundles_post_ra>
// kernel: tpu_custom_call.1
= control target key start
LH: loop header
LB: loop body
LE: loop exit
PB: predicated region body
PF: predicated region fallthrough
CT: control target
= control target key end

     0   :  { %s790_s0 = inlined_call_operand.vmem [shape: s32[2], index: 0, kind: input, shape index: {}]   ;;  %s791_s1 = inlined_call_operand.vmem [shape: s32[16,1], index: 1, kind: input, shape index: {}]   ;;  %s792_s2 = inlined_call_operand.vmem [shape: s32[16,1], index: 2, kind: input, shape index: {}]   ;;  %s793_s3 = inlined_call_operand.vmem [shape: f32[2,1,16], index: 3, kind: input, shape index: {}]   ;;  %s794_s4 = inlined_call_operand.vmem [shape: f32[2,16,32], index: 4, kind: input, shape index: {}]   ;;  %s795_s5 = inlined_call_operand.hbm [shape: f32[16,32], index: 5, kind: output, shape index: {}]  }
   0x1   :  { %s10_s20 = sshll.u32 %s790_s0, 4  ;;  %s11_s20 = int_to_ptr.vmem [resolvable:$true] %s10_s20 }
   0x2   :  { %s559_s21 = scalar_lea.vmem %s11_s20, 16  ;;  %p564_p1 = scmp.lt.s32.totalorder %s11_s20, %s11_s20 }
   0x3   :  { %p560_p0 = scmp.ne.s32.totalorder %s11_s20, %s559_s21  ;;  %p565_p2 = scmp.lt.s32.totalorder %s559_s21, %s559_s21 }
   0x5   :  { %p566_p3 = por %p565_p2, %p564_p1 }
   0x7   :  { %p567_p4 = pnand %p566_p3, %p560_p0 }
   0x9   :  { %570 = shalt.err (!%p567_p4)  }
   0xa   :  { %s637_s22 = smov [#allocation3]  }
   0xb   :  { %13 = dma.vmem_to_smem %s11_s20, 16, %s637_s22, [#allocation2] }
   0xc   :  { %615 = dma.done.wait [#allocation2], 16 }
   0xd   :  { %616 = vsyncadd [#allocation2], 4294967280 }
   0xe   :  { %15 = sfence }
   0xf   :  { %16 = vsyncpa [#allocation5], 0 }
  0x10   :  { %18 = vsyncpa [#allocation5 + $0x1], 0  ;;  %s676_s23 = smov 0   ;;  %s678_s24 = smov 0  }
  0x11   :  { %s680_s0 = smov 0   ;;  %s682_s25 = smov 0  }
  0x12 LB: > { %s697_s26 = sadd.s32 4294967295, %s635_s25   ;;  %s481_s27 = sadd.s32 4294967294, %s635_s25   ;;  %s635_s25 = sphi %s682_s25, %s801_s25   ;;  %s631_s0 = sphi %s680_s0, %s800_s0   ;;  %s627_s24 = sphi %s678_s24, %s799_s24   ;;  %s623_s23 = sphi %s676_s23, %s798_s23  }
  0x13   : > { %s701_s28 = sadd.s32 1, %s635_s25   ;;  %s139_s29 = sadd.s32 1, %s631_s0 }
  0x14   : > { %s136_s30 = ssub.s32 %s635_s25, %s701_s28  ;;  %p149_p5 = scmp.ne.s32.totalorder %s631_s0, %s627_s24 }
  0x15   : > { %p137_p6 = scmp.eq.s32.totalorder %s136_s30, 0  ;;  %p150_p7 = scmp.eq.s32.totalorder %s697_s26, 1 }
  0x16   : > { %p155_p8 = scmp.ne.s32.totalorder %s627_s24, %s623_s23  ;;  %p156_p9 = scmp.eq.s32.totalorder %s481_s27, 1 }
  0x17   : > { %s712_s6 = scalar_select %p137_p6, %s631_s0, %s139_s29  }
  0x18   : > { %p714_p10 = por %p150_p7, %p149_p5  ;;  %p718_p11 = por %p156_p9, %p155_p8 }
  0x19   : > { %p484_p12 = scmp.ge.s32.totalorder %s635_s25, 1  ;;  %p206_p13 = scmp.lt.s32.totalorder %s635_s25, 3 }
  0x1b   : > { %p207_p0 = pnand %p484_p12, %p206_p13 }
  0x1c   : > { %p245_p1 = scmp.lt.s32.totalorder (!%p207_p0), %s697_s26, 1  ;;  %v638_v0 = vmov (!%p207_p0), 0   ;;  %s253_s17 = sld [smem:[#allocation3 + %s697_s26]] (!%p207_p0)  ;;  %v270_v3 = vlaneseq (!%p207_p0)  ;;  %vm288_vm2 = vcmask (!%p207_p0), 130048   ;;  %v639_v15 = vmov (!%p207_p0), 0.0|0.0  }
  0x1d   : > { %210 = sbr.rel (%p207_p0) target bundleno = 716 (0x2cc), region = 36  ;;  %554 = vset.pattern.permute.xlu0 (!%p207_p0), %v638_v0  ;;  %s258_s21 = sld [smem:[#allocation3 + %s697_s26]] (!%p207_p0)  ;;  %507 = vmatprep.subr.bf16.mxu0 (!%p207_p0), %v639_v15  ;;  %vm640_vm4 = vmmov (!%p207_p0), 0   ;;  %v641_v16 = vmov (!%p207_p0), 0.0   ;;  %vm373_vm5 = vcmask (!%p207_p0), 261120  }
  0x1e   : > { %v271_v5 = vand.u32 (!%p207_p0), 127, %v270_v3  ;;  %504 = vmatprep.mubr.msk.f32.mxu0 (!%p207_p0), %vm640_vm4, %v641_v16  ;;  %s493_s11 = sshll.u32 (!%p207_p0), %s697_s26, 7 }
  0x22   : > { %p254_p2 = scmp.lt.s32.totalorder (!%p207_p0), %s253_s17, 1 }
  0x23   : > { %p259_p3 = scmp.lt.s32.totalorder (!%p207_p0), %s258_s21, 1 }
  0x24   : > { %s246_s9 = scalar_select %p245_p1, %s697_s26, 1 }
  0x25   : > { %s803_s17 = smov (!%p254_p2, %s253_s17), 1  ;;  %s805_s21 = smov (!%p259_p3, %s258_s21), 1 }
  0x26   : > { %s486_s10 = sshll.u32 %s246_s9, 3  ;;  %s256_s20 = scalar_lea.vmem %s793_s3, %s803_s17 }
  0x27   : > { %s248_s13 = scalar_lea.vmem %s791_s1, %s486_s10  ;;  %s252_s16 = scalar_lea.vmem %s792_s2, %s486_s10  ;;  %v490_v7 = vld [vmem:[%s256_s20] ss:$0 sm:$0xff] }
  0x28   : > { %v268_v1 = vld [vmem:[%s248_s13] sm:$0xff]  ;;  %s496_s22 = sshll.u32 %s805_s21, 4  ;;  %s242_s9 = sand.u32 1, %s627_s24  }
  0x29   : > { %273 = vperm.xlu0 %554, %v268_v1   ;;  %v269_v2 = vld [vmem:[%s252_s16] sm:$0xff]  ;;  %s263_s30 = scalar_lea.vmem %s794_s4, %s496_s22  ;;  %s485_s10 = sshll.u32 %s242_s9, 3 }
  0x2a   : > { %v265_v17 = vld [vmem:[%s263_s30] sm:$0xff]  ;;  %v266_v18 = vld [vmem:[%s263_s30 + $0x8] sm:$0xff]  ;;  %s244_s12 = scalar_lea.vmem [#allocation4], %s485_s10  ;;  %s748_s16 = scalar_lea.hbm %s795_s5, %s493_s11 }
  0x2b   : > { %v508_v19 = vpack.c.bf16 %v266_v18, %v265_v17  ;;  %s389_s13 = sshll.u32 %s244_s12, 4  ;;  %s376_s17 = scalar_lea.sflag [#allocation5], %s242_s9  ;;  %s750_s13 = int_to_ptr.vmem [resolvable:$true] %s389_s13 }
  0x2c   : > { %s571_s18 = scalar_lea.vmem %s750_s13, 128  ;;  %s642_s26 = smov [#allocation4]  }
  0x2d   : > { %277 = vperm.xlu0 %554, %v269_v2   ;;  %509 = vmatpush3.bf16.msra.mxu0 %v508_v19  ;;  %p572_p4 = scmp.ne.s32.totalorder %s750_s13, %s571_s18  ;;  %s575_s19 = sshll.u32 %s642_s26, 4  ;;  %s576_s19 = int_to_ptr.vmem [resolvable:$false] %s575_s19 }
  0x2e   : > { %s577_s20 = scalar_lea.vmem %s576_s19, 256  ;;  %p578_p7 = scmp.lt.s32.totalorder %s750_s13, %s576_s19 }
  0x2f   : > { %p573_p5 = pnand %p572_p4, %p714_p10  ;;  %p579_p8 = scmp.lt.s32.totalorder %s577_s20, %s571_s18 }
  0x31   : > { %p574_p6 = pneg %p573_p5  ;;  %p580_p9 = por %p579_p8, %p578_p7 }
  0x33   : > { %p581_p12 = pnand %p580_p9, %p574_p6 }
  0xa8   : > { %v274_v4 = vpop.permute.xlu0 %273 }
  0xa9   : > { %vm275_vm0 = vcmp.ge.s32.totalorder %v271_v5, %v274_v4 }
  0xac   : > { %v278_v6 = vpop.permute.xlu0 %277 }
  0xad   : > { %vm279_vm1 = vcmp.lt.s32.totalorder %v271_v5, %v278_v6 }
  0xae   : > { %vm280_vm3 = vmand %vm275_vm0, %vm279_vm1 }
  0xaf   : > { %v287_v8 = vsel %vm280_vm3, %v490_v7, -1e+30 }
  0xb0   : > { %v289_v9 = vsel %vm288_vm2, %v287_v8, -inf }
  0xb1   : > { %290 = vmax.xlane.f32.xlu1 %v289_v9 }
 0x13e   : > { %v291_v10 = vpop.xlane.xlu1 %290 }
 0x13f   : > { %v292_v11 = vsub.f32 %v287_v8, %v291_v10 }
 0x141   : > { %v293_v12 = vmul.f32 1.442695, %v292_v11 }
 0x143   : > { %555 = vpow2.f32 %v293_v12 }
 0x14d   : > { %v556_v13 = vpop.eup %555 }
 0x14e   : > { %v295_v14 = vsel %vm288_vm2, %v556_v13, 0.0 }
 0x14f   : > { %296 = vadd.xlane.f32.xlu1 %v295_v14 }
 0x1dc   : > { %v297_v20 = vpop.xlane.xlu1 %296 }
 0x1dd   : > { %557 = vrcp.f32 %v297_v20 }
 0x1e7   : > { %v558_v21 = vpop.eup %557 }
 0x1e8   : > { %v299_v22 = vmul.f32 %v558_v21, %v556_v13 }
 0x1ea   : > { %505 = vmatmul.mubr.msk.f32.vlgmr.msra.gmra.mrb[0].mxu0 %vm288_vm2, %v299_v22 }
 0x2bd   : > { %v369_v23 = vpop.f32.mrb[0].mxu0 }
 0x2be   : > { %374 = vst.msk [vmem:[%s244_s12] sm:$0xff] %vm373_vm5, %v369_v23  ;;  %v506_v24 = vpop.f32.mrb[1].mxu0 }
 0x2bf   : > { %584 = shalt.err (!%p581_p12)
}
 0x2c0   : > { %s585_s21 = scalar_lea.hbm %s748_s16, 128  ;;  %s589_s29 = scalar_lea.hbm %s795_s5, 256 }
 0x2c1   : > { %p586_p13 = scmp.ne.s32.totalorder %s748_s16, %s585_s21  ;;  %p590_p2 = scmp.lt.u32.totalorder %s748_s16, %s795_s5 }
 0x2c2   : > { %p591_p3 = scmp.lt.u32.totalorder %s589_s29, %s585_s21  ;;  %p593_p5 = scmp.lt.u32.totalorder %s585_s21, %s748_s16 }
 0x2c3   : > { %p587_p0 = pnand %p586_p13, %p714_p10 }
 0x2c4   : > { %p592_p4 = por %p591_p3, %p590_p2 }
 0x2c5   : > { %p588_p1 = pneg %p587_p0 }
 0x2c6   : > { %p594_p6 = por %p593_p5, %p592_p4 }
 0x2c8   : > { %p595_p7 = pnand %p594_p6, %p588_p1 }
 0x2ca   : > { %598 = shalt.err (!%p595_p7)
}
 0x2cb   : > { %510 = dma.vmem_to_hbm [thread:$0]  (%p714_p10), %s750_s13, 128, %s748_s16, %s376_s17  }
 0x2cc PF: > { %p516_p8 = scmp.ge.s32.totalorder %s635_s25, 2  ;;  %s401_s10 = sand.u32 1, %s623_s23  }
 0x2cd   : > { %s402_s11 = scalar_lea.sflag [#allocation5], %s401_s10 }
 0x2ce   : > { %p513_p9 = pnand %p516_p8, %p718_p11 }
 0x2d0   : > { %618 = dma.done.wait (!%p513_p9), %s402_s11, 128  }
 0x2d1   : > { %620 = vsyncadd (!%p513_p9), %s402_s11, 4294967168  ;;  %p21_p12 = scmp.ge.s32.totalorder %s701_s28, 4   ;;  %s798_s23 = smov %s627_s24 }
 0x2d2   : > { %s799_s24 = smov %s631_s0  ;;  %s800_s0 = smov %s712_s6 }
 0x2d3   : > { %s801_s25 = smov %s701_s28  ;;  %23 = sbr.rel (!%p21_p12) target bundleno = 18 (0x12), region = 80 }
 0x2da   :  { %407 = vsyncpa [#allocation5], 1 }
 0x2db   :  { %409 = vsyncpa [#allocation5 + $0x1], 1 }

</bundles_post_ra>
